<compile_context>
chip_gen: v7x
topology: tpu7x:2x2x1
jax: 0.10.0
libtpu: 0.0.40
codegen_flags: <defaults>
</compile_context>

<pallas_src>
import functools

import jax
import jax.numpy as jnp
from jax.experimental import pallas as pl
from jax.experimental.pallas import tpu as pltpu

_VMEM_LIMIT = 32 * 1024 * 1024


def _pick_hw_tile(hw, cap):
    """Largest lane tile: full H*W if it fits, else a multiple-of-128 divisor."""
    if hw <= cap:
        return hw
    t = (cap // 128) * 128
    while t >= 128:
        if hw % t == 0:
            return t
        t -= 128
    return hw  # no nice divisor: fall back to the whole spatial axis


def _stats_kernel(x_ref, wt_ref, ysum_ref, ysq_ref):
    """Pass 1: per-image, per-(oc,di,dj) sum and sum-of-squares of the
    (recomputed, never materialized) transposed-conv output."""
    @pl.when(pl.program_id(1) == 0)
    def _():
        ysum_ref[...] = jnp.zeros_like(ysum_ref)
        ysq_ref[...] = jnp.zeros_like(ysq_ref)

    # (C4, Cin) @ (Cin, thw) -> (C4, thw), f32 accumulation on the MXU.
    yt = jnp.dot(wt_ref[...], x_ref[0], preferred_element_type=jnp.float32)
    ysum_ref[...] += jnp.sum(yt, axis=1, keepdims=True)[None]
    ysq_ref[...] += jnp.sum(yt * yt, axis=1, keepdims=True)[None]


def _convt_bn_act_kernel(x_ref, wt_ref, scale_ref, shift_ref, o_ref, *, activation):
    """Pass 2: recompute the conv-transpose matmul, apply the pre-folded
    BatchNorm scale/shift and the activation; lane-dense (C4, thw) store."""
    yt = jnp.dot(wt_ref[...], x_ref[0], preferred_element_type=jnp.float32)
    z = yt * scale_ref[...] + shift_ref[...]
    if activation == "tanh":
        z = jnp.tanh(z)
    else:  # LeakyReLU(negative_slope=0.2)
        z = jnp.where(z > 0, z, 0.2 * z)
    o_ref[...] = z[None].astype(o_ref.dtype)


def _block_g_forward_impl(x, weight, gamma, beta, *, is_input_layer=False,
                          activation="leakyrelu", eps=1e-5,
                          mxu_dtype=jnp.bfloat16, max_hw_tile=2048):
    """x: (N, Cin, H, W) NCHW.  weight: (Cin, Cout, K, K) (PyTorch layout)."""
    N, Cin, H, W = x.shape
    w_cin, Cout, KH, KW = weight.shape
    assert w_cin == Cin and KH == KW
    K = KH
    if is_input_layer:
        # kernel=4, stride=1 on the usual 1x1 latent input is again a pure matmul.
        # TODO(synk): overlapping stride-1 transposed conv with H,W > 1 not implemented.
        assert K == 4 and H == 1 and W == 1
    else:
        assert K == 2

    C4 = Cout * K * K
    HW = H * W
    thw = _pick_hw_tile(HW, max_hw_tile)
    n_hw = HW // thw
    count = float(N * HW * K * K)        # elements per channel: N * (H*K) * (W*K)

    # NCHW kept as-is: (N, Cin, H, W) -> (N, Cin, H*W) is a free reshape (no transpose).
    x3 = x.reshape(N, Cin, HW).astype(mxu_dtype)
    # (Cin, Cout, K, K) -> (Cout*K*K, Cin); tiny parameter tensor, done once.
    wt = jnp.transpose(weight, (1, 2, 3, 0)).reshape(C4, Cin).astype(mxu_dtype)

    grid = (N, n_hw)
    x_spec = pl.BlockSpec((1, Cin, thw), lambda n, j: (n, 0, j))
    w_spec = pl.BlockSpec((C4, Cin), lambda n, j: (0, 0))

    # ---- pass 1: BN statistics (per-image partials; batch axis parallel) ----
    ysum, ysq = pl.pallas_call(
        _stats_kernel,
        out_shape=(jax.ShapeDtypeStruct((N, C4, 1), jnp.float32),
                   jax.ShapeDtypeStruct((N, C4, 1), jnp.float32)),
        grid_spec=pltpu.PrefetchScalarGridSpec(
            num_scalar_prefetch=0, grid=grid,
            in_specs=[x_spec, w_spec],
            out_specs=[pl.BlockSpec((1, C4, 1), lambda n, j: (n, 0, 0)),
                       pl.BlockSpec((1, C4, 1), lambda n, j: (n, 0, 0))]),
        compiler_params=pltpu.CompilerParams(
            dimension_semantics=("parallel", "arbitrary"),
            vmem_limit_bytes=_VMEM_LIMIT),
    )(x3, wt)

    # ---- tiny glue on (C4,)-sized arrays; fuses into the surrounding jit ----
    ch_sum = jnp.sum(ysum, axis=(0, 2)).reshape(Cout, K * K).sum(axis=1)
    ch_sq = jnp.sum(ysq, axis=(0, 2)).reshape(Cout, K * K).sum(axis=1)
    mean = ch_sum / count
    var = jnp.maximum(ch_sq / count - mean * mean, 0.0)    # biased var, clamped >= 0
    scale_c = gamma.astype(jnp.float32) * jax.lax.rsqrt(var + eps)
    shift_c = beta.astype(jnp.float32) - mean * scale_c
    scale_col = jnp.repeat(scale_c, K * K).reshape(C4, 1)
    shift_col = jnp.repeat(shift_c, K * K).reshape(C4, 1)

    # ---- pass 2: fused ConvTranspose (recomputed) + BatchNorm + activation ----
    yt_out = pl.pallas_call(
        functools.partial(_convt_bn_act_kernel, activation=activation),
        out_shape=jax.ShapeDtypeStruct((N, C4, HW), jnp.float32),
        grid_spec=pltpu.PrefetchScalarGridSpec(
            num_scalar_prefetch=0, grid=grid,
            in_specs=[x_spec, w_spec,
                      pl.BlockSpec((C4, 1), lambda n, j: (0, 0)),
                      pl.BlockSpec((C4, 1), lambda n, j: (0, 0))],
            out_specs=pl.BlockSpec((1, C4, thw), lambda n, j: (n, 0, j))),
        compiler_params=pltpu.CompilerParams(
            dimension_semantics=("parallel", "parallel"),
            vmem_limit_bytes=_VMEM_LIMIT),
    )(x3, wt, scale_col, shift_col)

    # ---- reassemble to NCHW: (N, Cout*K*K, H*W) -> (N, Cout, H*K, W*K) ----
    out = yt_out.reshape(N, Cout, K, K, H, W)
    out = jnp.transpose(out, (0, 1, 4, 2, 5, 3)).reshape(N, Cout, H * K, W * K)
    return out


block_g_forward = jax.jit(
    _block_g_forward_impl,
    static_argnames=("is_input_layer", "activation", "eps", "mxu_dtype",
                     "max_hw_tile"))


def _reference(x, weight, gamma, beta, eps=1e-5):
    """Pure-JAX reference (independent of the kernel's flattening / tiling)."""
    N, Cin, H, W = x.shape
    _, Cout, K, _ = weight.shape
    pre = jnp.einsum("nchw,codk->nohdwk", x, weight,
                     precision=jax.lax.Precision.HIGHEST)
    pre = pre.reshape(N, Cout, H * K, W * K)
    mean = pre.mean(axis=(0, 2, 3))
    var = pre.var(axis=(0, 2, 3))  # biased
    z = (pre - mean[None, :, None, None]) * (
        gamma[None, :, None, None] / jnp.sqrt(var[None, :, None, None] + eps)
    ) + beta[None, :, None, None]
    return jnp.where(z > 0, z, 0.2 * z)


if __name__ == "__main__":
    key = jax.random.PRNGKey(0)
    kx, kw = jax.random.split(key)

    N, Cin, H, W = 2, 4, 16, 16
    Cout, K = 8, 2

    x = jax.random.normal(kx, (N, Cin, H, W), dtype=jnp.float32)
    # PyTorch ConvTranspose2d weight layout: (in_channels, out_channels, kH, kW)
    weight = 0.1 * jax.random.normal(kw, (Cin, Cout, K, K), dtype=jnp.float32)
    # PyTorch BatchNorm2d default init: weight=1, bias=0
    gamma = jnp.ones((Cout,), dtype=jnp.float32)
    beta = jnp.zeros((Cout,), dtype=jnp.float32)

    # 1) exact-f32 MXU path: tight check against the f32 reference.
    out_f32 = jax.block_until_ready(
        block_g_forward(x, weight, gamma, beta, mxu_dtype=jnp.float32))
    ref_f32 = _reference(x, weight, gamma, beta)
    assert out_f32.shape == (N, Cout, H * K, W * K), out_f32.shape
    assert jnp.allclose(out_f32, ref_f32, atol=1e-4, rtol=1e-4), float(
        jnp.max(jnp.abs(out_f32 - ref_f32)))

    # 2) default bf16 MXU feed (perf-review recommendation): compare against a
    #    reference computed in f32 on identically bf16-quantized inputs.
    out_bf = jax.block_until_ready(block_g_forward(x, weight, gamma, beta))
    ref_bf = _reference(x.astype(jnp.bfloat16).astype(jnp.float32),
                        weight.astype(jnp.bfloat16).astype(jnp.float32),
                        gamma, beta)
    assert out_bf.shape == (N, Cout, H * K, W * K), out_bf.shape
    assert jnp.allclose(out_bf, ref_bf, atol=1e-3, rtol=1e-3), float(
        jnp.max(jnp.abs(out_bf - ref_bf)))

    print("KERNEL_OK")
</pallas_src>

<mosaic_0001>
module attributes {stable_mosaic.version = 11 : i64} {
  func.func @_stats_kernel(%arg0: i32, %arg1: i32, %arg2: memref<1x4x256xf32, #tpu.memory_space<vmem>>, %arg3: memref<32x4xf32, #tpu.memory_space<vmem>>, %arg4: memref<1x32x1xf32, #tpu.memory_space<vmem>>, %arg5: memref<1x32x1xf32, #tpu.memory_space<vmem>>) attributes {dimension_semantics = [#tpu.dimension_semantics<parallel>, #tpu.dimension_semantics<arbitrary>], iteration_bounds = array<i64: 2, 1>, scalar_prefetch = 0 : i64, scratch_operands = 0 : i64, tpu.core_type = #tpu.core_type<tc>, window_params = [{transform_indices = @transform_0, window_bounds = array<i64: 1, 4, 256>}, {pipeline_mode = #tpu.pipeline_mode<synchronous>, transform_indices = @transform_1, window_bounds = array<i64: 32, 4>}, {transform_indices = @transform_2, window_bounds = array<i64: 1, 32, 1>}, {transform_indices = @transform_3, window_bounds = array<i64: 1, 32, 1>}]} {
    %c0_i32 = arith.constant 0 : i32
    %0 = arith.cmpi eq, %arg1, %c0_i32 : i32
    %1 = arith.extui %0 : i1 to i32
    %c0_i32_0 = arith.constant 0 : i32
    %2 = arith.cmpi ne, %1, %c0_i32_0 : i32
    scf.if %2 {
      %cst_19 = arith.constant 0.000000e+00 : f32
      %20 = vector.broadcast %cst_19 : f32 to vector<1x32x1xf32>
      %c0_20 = arith.constant 0 : index
      %c0_21 = arith.constant 0 : index
      %c0_22 = arith.constant 0 : index
      %21 = vector.load %arg4[%c0_20, %c0_21, %c0_22] : memref<1x32x1xf32, #tpu.memory_space<vmem>>, vector<1x32x1xf32>
      tpu.vector_store %arg4[%c0_20, %c0_21, %c0_22], %20 {strides = array<i32>} : memref<1x32x1xf32, #tpu.memory_space<vmem>>, vector<1x32x1xf32>,
      %cst_23 = arith.constant 0.000000e+00 : f32
      %22 = vector.broadcast %cst_23 : f32 to vector<1x32x1xf32>
      %c0_24 = arith.constant 0 : index
      %c0_25 = arith.constant 0 : index
      %c0_26 = arith.constant 0 : index
      %23 = vector.load %arg5[%c0_24, %c0_25, %c0_26] : memref<1x32x1xf32, #tpu.memory_space<vmem>>, vector<1x32x1xf32>
      tpu.vector_store %arg5[%c0_24, %c0_25, %c0_26], %22 {strides = array<i32>} : memref<1x32x1xf32, #tpu.memory_space<vmem>>, vector<1x32x1xf32>,
    } else {
    }
    %c0 = arith.constant 0 : index
    %c0_1 = arith.constant 0 : index
    %3 = vector.load %arg3[%c0, %c0_1] : memref<32x4xf32, #tpu.memory_space<vmem>>, vector<32x4xf32>
    %c0_2 = arith.constant 0 : index
    %c0_3 = arith.constant 0 : index
    %c0_4 = arith.constant 0 : index
    %4 = vector.load %arg2[%c0_2, %c0_3, %c0_4] : memref<1x4x256xf32, #tpu.memory_space<vmem>>, vector<1x4x256xf32>
    %5 = vector.shape_cast %4 : vector<1x4x256xf32> to vector<4x256xf32>
    %cst = arith.constant dense<0.000000e+00> : vector<32x256xf32>
    %6 = tpu.matmul %3, %5, %cst {dimension_numbers = #tpu.dot_dimension_numbers<[1], [0], [0], [1], [0, 0, 1, 1], [], []>} : vector<32x4xf32>, vector<4x256xf32>, vector<32x256xf32> -> vector<32x256xf32>
    %c0_5 = arith.constant 0 : index
    %c0_6 = arith.constant 0 : index
    %c0_7 = arith.constant 0 : index
    %7 = vector.load %arg4[%c0_5, %c0_6, %c0_7] : memref<1x32x1xf32, #tpu.memory_space<vmem>>, vector<1x32x1xf32>
    %cst_8 = arith.constant dense<0.000000e+00> : vector<32xf32>
    %8 = vector.multi_reduction <add>, %6, %cst_8 [1] : vector<32x256xf32> to vector<32xf32>
    %9 = vector.shape_cast %8 : vector<32xf32> to vector<32x1xf32>
    %10 = vector.shape_cast %9 : vector<32x1xf32> to vector<1x32x1xf32>
    %11 = arith.addf %7, %10 : vector<1x32x1xf32>
    %c0_9 = arith.constant 0 : index
    %c0_10 = arith.constant 0 : index
    %c0_11 = arith.constant 0 : index
    %12 = vector.load %arg4[%c0_9, %c0_10, %c0_11] : memref<1x32x1xf32, #tpu.memory_space<vmem>>, vector<1x32x1xf32>
    tpu.vector_store %arg4[%c0_9, %c0_10, %c0_11], %11 {strides = array<i32>} : memref<1x32x1xf32, #tpu.memory_space<vmem>>, vector<1x32x1xf32>,
    %c0_12 = arith.constant 0 : index
    %c0_13 = arith.constant 0 : index
    %c0_14 = arith.constant 0 : index
    %13 = vector.load %arg5[%c0_12, %c0_13, %c0_14] : memref<1x32x1xf32, #tpu.memory_space<vmem>>, vector<1x32x1xf32>
    %14 = arith.mulf %6, %6 : vector<32x256xf32>
    %cst_15 = arith.constant dense<0.000000e+00> : vector<32xf32>
    %15 = vector.multi_reduction <add>, %14, %cst_15 [1] : vector<32x256xf32> to vector<32xf32>
    %16 = vector.shape_cast %15 : vector<32xf32> to vector<32x1xf32>
    %17 = vector.shape_cast %16 : vector<32x1xf32> to vector<1x32x1xf32>
    %18 = arith.addf %13, %17 : vector<1x32x1xf32>
    %c0_16 = arith.constant 0 : index
    %c0_17 = arith.constant 0 : index
    %c0_18 = arith.constant 0 : index
    %19 = vector.load %arg5[%c0_16, %c0_17, %c0_18] : memref<1x32x1xf32, #tpu.memory_space<vmem>>, vector<1x32x1xf32>
    tpu.vector_store %arg5[%c0_16, %c0_17, %c0_18], %18 {strides = array<i32>} : memref<1x32x1xf32, #tpu.memory_space<vmem>>, vector<1x32x1xf32>,
    return
  }
  func.func @transform_0(%arg0: i32, %arg1: i32) -> (i32, i32, i32) {
    %c0_i32 = arith.constant 0 : i32
    %c0_i32_0 = arith.constant 0 : i32
    return %arg0, %c0_i32, %arg1 : i32, i32, i32
  }
  func.func @transform_1(%arg0: i32, %arg1: i32) -> (i32, i32) {
    %c0_i32 = arith.constant 0 : i32
    %c0_i32_0 = arith.constant 0 : i32
    %c0_i32_1 = arith.constant 0 : i32
    return %c0_i32, %c0_i32_0 : i32, i32
  }
  func.func @transform_2(%arg0: i32, %arg1: i32) -> (i32, i32, i32) {
    %c0_i32 = arith.constant 0 : i32
    %c0_i32_0 = arith.constant 0 : i32
    %c0_i32_1 = arith.constant 0 : i32
    return %arg0, %c0_i32, %c0_i32_0 : i32, i32, i32
  }
  func.func @transform_3(%arg0: i32, %arg1: i32) -> (i32, i32, i32) {
    %c0_i32 = arith.constant 0 : i32
    %c0_i32_0 = arith.constant 0 : i32
    %c0_i32_1 = arith.constant 0 : i32
    return %arg0, %c0_i32, %c0_i32_0 : i32, i32, i32
  }
}

module attributes {stable_mosaic.version = 11 : i64} {
  func.func @_convt_bn_act_kernel(%arg0: i32, %arg1: i32, %arg2: memref<1x4x256xf32, #tpu.memory_space<vmem>>, %arg3: memref<32x4xf32, #tpu.memory_space<vmem>>, %arg4: memref<32x1xf32, #tpu.memory_space<vmem>>, %arg5: memref<32x1xf32, #tpu.memory_space<vmem>>, %arg6: memref<1x32x256xf32, #tpu.memory_space<vmem>>) attributes {dimension_semantics = [#tpu.dimension_semantics<parallel>, #tpu.dimension_semantics<parallel>], iteration_bounds = array<i64: 2, 1>, scalar_prefetch = 0 : i64, scratch_operands = 0 : i64, tpu.core_type = #tpu.core_type<tc>, window_params = [{transform_indices = @transform_0, window_bounds = array<i64: 1, 4, 256>}, {pipeline_mode = #tpu.pipeline_mode<synchronous>, transform_indices = @transform_1, window_bounds = array<i64: 32, 4>}, {pipeline_mode = #tpu.pipeline_mode<synchronous>, transform_indices = @transform_2, window_bounds = array<i64: 32, 1>}, {pipeline_mode = #tpu.pipeline_mode<synchronous>, transform_indices = @transform_3, window_bounds = array<i64: 32, 1>}, {transform_indices = @transform_4, window_bounds = array<i64: 1, 32, 256>}]} {
    %c0 = arith.constant 0 : index
    %c0_0 = arith.constant 0 : index
    %0 = vector.load %arg3[%c0, %c0_0] : memref<32x4xf32, #tpu.memory_space<vmem>>, vector<32x4xf32>
    %c0_1 = arith.constant 0 : index
    %c0_2 = arith.constant 0 : index
    %c0_3 = arith.constant 0 : index
    %1 = vector.load %arg2[%c0_1, %c0_2, %c0_3] : memref<1x4x256xf32, #tpu.memory_space<vmem>>, vector<1x4x256xf32>
    %2 = vector.shape_cast %1 : vector<1x4x256xf32> to vector<4x256xf32>
    %cst = arith.constant dense<0.000000e+00> : vector<32x256xf32>
    %3 = tpu.matmul %0, %2, %cst {dimension_numbers = #tpu.dot_dimension_numbers<[1], [0], [0], [1], [0, 0, 1, 1], [], []>} : vector<32x4xf32>, vector<4x256xf32>, vector<32x256xf32> -> vector<32x256xf32>
    %c0_4 = arith.constant 0 : index
    %c0_5 = arith.constant 0 : index
    %4 = vector.load %arg4[%c0_4, %c0_5] : memref<32x1xf32, #tpu.memory_space<vmem>>, vector<32x1xf32>
    %5 = vector.broadcast %4 : vector<32x1xf32> to vector<32x256xf32>
    %6 = arith.mulf %3, %5 : vector<32x256xf32>
    %c0_6 = arith.constant 0 : index
    %c0_7 = arith.constant 0 : index
    %7 = vector.load %arg5[%c0_6, %c0_7] : memref<32x1xf32, #tpu.memory_space<vmem>>, vector<32x1xf32>
    %8 = vector.broadcast %7 : vector<32x1xf32> to vector<32x256xf32>
    %9 = arith.addf %6, %8 : vector<32x256xf32>
    %cst_8 = arith.constant 0.000000e+00 : f32
    %10 = vector.broadcast %cst_8 : f32 to vector<32x256xf32>
    %11 = arith.cmpf ogt, %9, %10 : vector<32x256xf32>
    %cst_9 = arith.constant 2.000000e-01 : f32
    %12 = vector.broadcast %cst_9 : f32 to vector<32x256xf32>
    %13 = arith.mulf %12, %9 : vector<32x256xf32>
    %14 = arith.select %11, %9, %13 : vector<32x256xi1>, vector<32x256xf32>
    %15 = vector.shape_cast %14 : vector<32x256xf32> to vector<1x32x256xf32>
    %c0_10 = arith.constant 0 : index
    %c0_11 = arith.constant 0 : index
    %c0_12 = arith.constant 0 : index
    %16 = vector.load %arg6[%c0_10, %c0_11, %c0_12] : memref<1x32x256xf32, #tpu.memory_space<vmem>>, vector<1x32x256xf32>
    tpu.vector_store %arg6[%c0_10, %c0_11, %c0_12], %15 {strides = array<i32>} : memref<1x32x256xf32, #tpu.memory_space<vmem>>, vector<1x32x256xf32>,
    return
  }
  func.func @transform_0(%arg0: i32, %arg1: i32) -> (i32, i32, i32) {
    %c0_i32 = arith.constant 0 : i32
    %c0_i32_0 = arith.constant 0 : i32
    return %arg0, %c0_i32, %arg1 : i32, i32, i32
  }
  func.func @transform_1(%arg0: i32, %arg1: i32) -> (i32, i32) {
    %c0_i32 = arith.constant 0 : i32
    %c0_i32_0 = arith.constant 0 : i32
    %c0_i32_1 = arith.constant 0 : i32
    return %c0_i32, %c0_i32_0 : i32, i32
  }
  func.func @transform_2(%arg0: i32, %arg1: i32) -> (i32, i32) {
    %c0_i32 = arith.constant 0 : i32
    %c0_i32_0 = arith.constant 0 : i32
    %c0_i32_1 = arith.constant 0 : i32
    return %c0_i32, %c0_i32_0 : i32, i32
  }
  func.func @transform_3(%arg0: i32, %arg1: i32) -> (i32, i32) {
    %c0_i32 = arith.constant 0 : i32
    %c0_i32_0 = arith.constant 0 : i32
    %c0_i32_1 = arith.constant 0 : i32
    return %c0_i32, %c0_i32_0 : i32, i32
  }
  func.func @transform_4(%arg0: i32, %arg1: i32) -> (i32, i32, i32) {
    %c0_i32 = arith.constant 0 : i32
    %c0_i32_0 = arith.constant 0 : i32
    return %arg0, %c0_i32, %arg1 : i32, i32, i32
  }
}

</mosaic_0001>

<bundles_post_ra>
// kernel: _block_g_forward_impl.2
= control target key start
LH: loop header
LB: loop body
LE: loop exit
PB: predicated region body
PF: predicated region fallthrough
CT: control target
= control target key end

     0   :  { %s593_s12 = smov 0   ;;  %s595_s13 = smov 0   ;;  %s685_s0 = inlined_call_operand.vmem [shape: f32[2,4,256], index: 0, kind: input, shape index: {}]   ;;  %s686_s1 = inlined_call_operand.vmem [shape: f32[32,4], index: 1, kind: input, shape index: {}]   ;;  %s687_s2 = inlined_call_operand.vmem [shape: f32[2,32,1], index: 2, kind: output, shape index: {0}]   ;;  %s688_s3 = inlined_call_operand.vmem [shape: f32[2,32,1], index: 3, kind: output, shape index: {1}]  }
   0x1   :  { %s597_s14 = smov 0  }
   0x2 LB: > { %s26_s15 = sadd.s32 1, %s566_s13  ;;  %p502_p0 = scmp.ge.s32.totalorder %s570_s14, 1  ;;  %s570_s14 = sphi %s597_s14, %s14_s14   ;;  %s566_s13 = sphi %s595_s13, %s690_s13   ;;  %s562_s12 = sphi %s593_s12, %s689_s12  }
   0x3   : > { %p28_p1 = scmp.ge.s32.totalorder %s26_s15, 2  ;;  %p159_p2 = scmp.lt.s32.totalorder %s570_s14, 3 }
   0x5   : > { %s692_s15 = smov (%p28_p1, %s26_s15), 0  ;;  %p160_p3 = pnand %p502_p0, %p159_p2 }
   0x6   : > { %p193_p4 = scmp.lt.s32.totalorder (!%p160_p3), %s562_s12, 1  ;;  %v572_v0 = vmov (!%p160_p3), 0.0   ;;  %vm245_vm0 = vcmask (!%p160_p3), 1043456   ;;  %v225_v3 = vld [vmem:[%s686_s1] sm:$0xff] (!%p160_p3)  ;;  %vm232_vm1 = vcmask (!%p160_p3), 31744   ;;  %v227_v4 = vld [vmem:[%s686_s1 + $0x10] sm:$0xff] (!%p160_p3) }
   0x7   : > { %163 = sbr.rel (%p160_p3) target bundleno = 394 (0x18a), region = 28  ;;  %314 = vmatprep.mubr.f32.mxu0 (!%p160_p3), %v572_v0  ;;  %326 = vmatprep.mubr.f32.mxu1 (!%p160_p3), %v572_v0  ;;  %v228_v5 = vld [vmem:[%s686_s1 + $0x18] sm:$0xff] (!%p160_p3)  ;;  %v226_v6 = vld [vmem:[%s686_s1 + $0x8] sm:$0xff] (!%p160_p3)  ;;  %vm216_vm2 = vcmask (!%p160_p3), 7168  }
   0xe   : > { %s694_s12 = smov (!%p193_p4, %s562_s12), 1 }
   0xf   : > { %s517_s16 = sshll.u32 %s694_s12, 3  ;;  %s518_s28 = sshll.u32 %s694_s12, 5 }
  0x10   : > { %s200_s19 = scalar_lea.vmem %s685_s0, %s517_s16  ;;  %s629_s4 = scalar_lea.vmem %s687_s2, %s518_s28 }
  0x11   : > { %v229_v1 = vld [vmem:[%s200_s19] sm:$0xff]  ;;  %s634_s7 = scalar_lea.vmem %s688_s3, %s518_s28  ;;  %219 = vst.msk [vmem:[%s629_s4 + $0x10] sm:$0xff] %vm216_vm2, %v572_v0  ;;  %217 = vst.msk [vmem:[%s629_s4] sm:$0xff] %vm216_vm2, %v572_v0 }
  0x12   : > { %v231_v2 = vcombine.high %v229_v1, %v229_v1  ;;  %218 = vst.msk [vmem:[%s629_s4 + $0x8] sm:$0xff] %vm216_vm2, %v572_v0  ;;  %220 = vst.msk [vmem:[%s629_s4 + $0x18] sm:$0xff] %vm216_vm2, %v572_v0 }
  0x13   : > { %221 = vst.msk [vmem:[%s634_s7] sm:$0xff] %vm216_vm2, %v572_v0  ;;  %222 = vst.msk [vmem:[%s634_s7 + $0x8] sm:$0xff] %vm216_vm2, %v572_v0 }
  0x14   : > { %509 = vmatprep.subr.msk.mxu0 %vm245_vm0, %v231_v2  ;;  %520 = vmatprep.subr.msk.mxu1 %vm245_vm0, %v231_v2  ;;  %223 = vst.msk [vmem:[%s634_s7 + $0x10] sm:$0xff] %vm216_vm2, %v572_v0  ;;  %224 = vst.msk [vmem:[%s634_s7 + $0x18] sm:$0xff] %vm216_vm2, %v572_v0 }
  0x15   : > { %510 = vmatpush1.msk.msra.mxu0 %vm245_vm0, %v229_v1  ;;  %521 = vmatpush1.msk.msra.mxu1 %vm245_vm0, %v229_v1 }
  0x16   : > { %511 = vmatmul.mubr.msk.f32.vlgmr.msra.gmra.mrb[0].mxu0 %vm232_vm1, %v225_v3  ;;  %513 = vmatmul.mubr.msk.f32.vlgmr.msra.gmra.mrb[0].mxu1 %vm232_vm1, %v227_v4 }
  0x17   : > { %332 = vmatprep.mubr.f32.mxu1 %v572_v0  ;;  %320 = vmatprep.mubr.f32.mxu0 %v572_v0 }
  0x18   : > { %v341_v31 = vld [vmem:[%s629_s4 + $0x10] sm:$0xff]  ;;  %v339_v32 = vld [vmem:[%s629_s4] sm:$0xff] }
  0x19   : > { %v342_v37 = vld [vmem:[%s629_s4 + $0x18] sm:$0xff]  ;;  %v340_v44 = vld [vmem:[%s629_s4 + $0x8] sm:$0xff] }
  0x1a   : > { %514 = vmatmul.mubr.msk.f32.gmra.mrb[2].mxu1 %vm232_vm1, %v228_v5  ;;  %512 = vmatmul.mubr.msk.f32.gmra.mrb[2].mxu0 %vm232_vm1, %v226_v6  ;;  %v364_v38 = vld [vmem:[%s634_s7] sm:$0xff]  ;;  %v365_v43 = vld [vmem:[%s634_s7 + $0x8] sm:$0xff] }
  0x1b   : > { %v367_v49 = vld [vmem:[%s634_s7 + $0x18] sm:$0xff]  ;;  %v366_v50 = vld [vmem:[%s634_s7 + $0x10] sm:$0xff] }
  0xe9   : > { %v316_v7 = vpop.f32.mrb[0].mxu0  ;;  %v328_v8 = vpop.f32.mrb[0].mxu1 }
  0xea   : > { %v368_v9 = vmul.f32 %v316_v7, %v316_v7  ;;  %v372_v10 = vmul.f32 %v328_v8, %v328_v8  ;;  %v318_v11 = vpop.f32.mrb[1].mxu0  ;;  %v330_v12 = vpop.f32.mrb[1].mxu1 }
  0xeb   : > { %v369_v13 = vmul.f32 %v318_v11, %v318_v11  ;;  %v373_v14 = vmul.f32 %v330_v12, %v330_v12  ;;  %v349_v15 = vadd.f32 %v330_v12, %v328_v8  ;;  %v343_v16 = vadd.f32 %v318_v11, %v316_v7 }
  0xed   : > { %350 = vadd.xlane.f32.xlu1 %v349_v15  ;;  %v334_v17 = vpop.f32.mrb[2].mxu1  ;;  %344 = vadd.xlane.f32.xlu0 %v343_v16  ;;  %v322_v18 = vpop.f32.mrb[2].mxu0  ;;  %v376_v19 = vadd.f32 %v369_v13, %v368_v9  ;;  %v382_v20 = vadd.f32 %v373_v14, %v372_v10 }
  0xee   : > { %v374_v21 = vmul.f32 %v334_v17, %v334_v17  ;;  %v370_v22 = vmul.f32 %v322_v18, %v322_v18  ;;  %v336_v23 = vpop.f32.mrb[3].mxu1  ;;  %v324_v24 = vpop.f32.mrb[3].mxu0 }
  0xef   : > { %v352_v25 = vadd.f32 %v336_v23, %v334_v17  ;;  %v375_v26 = vmul.f32 %v336_v23, %v336_v23  ;;  %v346_v27 = vadd.f32 %v324_v24, %v322_v18  ;;  %v371_v28 = vmul.f32 %v324_v24, %v324_v24 }
  0xf1   : > { %353 = vadd.xlane.f32.xlu1 %v352_v25  ;;  %377 = vadd.xlane.f32.xlu0 %v376_v19  ;;  %v379_v29 = vadd.f32 %v371_v28, %v370_v22  ;;  %v385_v30 = vadd.f32 %v375_v26, %v374_v21 }
  0xf5   : > { %380 = vadd.xlane.f32.xlu1 %v379_v29  ;;  %347 = vadd.xlane.f32.xlu0 %v346_v27 }
  0xf9   : > { %386 = vadd.xlane.f32.xlu1 %v385_v30  ;;  %383 = vadd.xlane.f32.xlu0 %v382_v20 }
 0x17a   : > { %v351_v33 = vpop.xlane.xlu1 %350  ;;  %v345_v34 = vpop.xlane.xlu0 %344 }
 0x17b   : > { %v357_v35 = vadd.f32 %v351_v33, %v341_v31  ;;  %v355_v36 = vadd.f32 %v345_v34, %v339_v32 }
 0x17d   : > { %362 = vst.msk [vmem:[%s629_s4 + $0x10] sm:$0xff] %vm216_vm2, %v357_v35  ;;  %360 = vst.msk [vmem:[%s629_s4] sm:$0xff] %vm216_vm2, %v355_v36 }
 0x17e   : > { %v354_v39 = vpop.xlane.xlu1 %353  ;;  %v378_v40 = vpop.xlane.xlu0 %377 }
 0x17f   : > { %v358_v41 = vadd.f32 %v354_v39, %v342_v37  ;;  %v388_v42 = vadd.f32 %v378_v40, %v364_v38 }
 0x181   : > { %363 = vst.msk [vmem:[%s629_s4 + $0x18] sm:$0xff] %vm216_vm2, %v358_v41  ;;  %392 = vst.msk [vmem:[%s634_s7] sm:$0xff] %vm216_vm2, %v388_v42 }
 0x182   : > { %v381_v45 = vpop.xlane.xlu1 %380  ;;  %v348_v46 = vpop.xlane.xlu0 %347 }
 0x183   : > { %v389_v47 = vadd.f32 %v381_v45, %v365_v43  ;;  %v356_v48 = vadd.f32 %v348_v46, %v340_v44 }
 0x185   : > { %393 = vst.msk [vmem:[%s634_s7 + $0x8] sm:$0xff] %vm216_vm2, %v389_v47  ;;  %361 = vst.msk [vmem:[%s629_s4 + $0x8] sm:$0xff] %vm216_vm2, %v356_v48 }
 0x186   : > { %v387_v51 = vpop.xlane.xlu1 %386  ;;  %v384_v52 = vpop.xlane.xlu0 %383 }
 0x187   : > { %v391_v53 = vadd.f32 %v387_v51, %v367_v49  ;;  %v390_v54 = vadd.f32 %v384_v52, %v366_v50 }
 0x189   : > { %395 = vst.msk [vmem:[%s634_s7 + $0x18] sm:$0xff] %vm216_vm2, %v391_v53  ;;  %394 = vst.msk [vmem:[%s634_s7 + $0x10] sm:$0xff] %vm216_vm2, %v390_v54 }
 0x18a PF: > { %s14_s14 = sadd.s32 1, %s570_s14   ;;  %s689_s12 = smov %s566_s13 }
 0x18b   : > { %p11_p5 = scmp.ge.s32.totalorder %s14_s14, 4   ;;  %s690_s13 = smov %s692_s15 }
 0x18d   :  { %13 = sbr.rel (!%p11_p5) target bundleno = 2 (0x2), region = 74 }

// kernel: _block_g_forward_impl.3
= control target key start
LH: loop header
LB: loop body
LE: loop exit
PB: predicated region body
PF: predicated region fallthrough
CT: control target
= control target key end

     0   :  { %s635_s15 = smov 0   ;;  %s637_s16 = smov 0   ;;  %s722_s0 = inlined_call_operand.vmem [shape: f32[2,4,256], index: 0, kind: input, shape index: {}]   ;;  %s723_s1 = inlined_call_operand.vmem [shape: f32[32,4], index: 1, kind: input, shape index: {}]   ;;  %s724_s2 = inlined_call_operand.vmem [shape: f32[32,1], index: 2, kind: input, shape index: {}]   ;;  %s725_s3 = inlined_call_operand.vmem [shape: f32[32,1], index: 3, kind: input, shape index: {}]   ;;  %s726_s4 = inlined_call_operand.vmem [shape: f32[2,32,256], index: 4, kind: output, shape index: {}]  }
   0x1   :  { %s639_s17 = smov 0  }
   0x2 LB: > { %s26_s18 = sadd.s32 1, %s602_s16  ;;  %p538_p0 = scmp.ge.s32.totalorder %s606_s17, 1  ;;  %s606_s17 = sphi %s639_s17, %s14_s17   ;;  %s602_s16 = sphi %s637_s16, %s728_s16   ;;  %s598_s15 = sphi %s635_s15, %s727_s15  }
   0x3   : > { %p28_p1 = scmp.ge.s32.totalorder %s26_s18, 2  ;;  %p183_p2 = scmp.lt.s32.totalorder %s606_s17, 3 }
   0x5   : > { %s730_s18 = smov (%p28_p1, %s26_s18), 0  ;;  %p184_p3 = pnand %p538_p0, %p183_p2 }
   0x6   : > { %p218_p4 = scmp.lt.s32.totalorder (!%p184_p3), %s598_s15, 1  ;;  %v608_v0 = vmov (!%p184_p3), 0.0   ;;  %v353_v1 = vld [vmem:[%s724_s2 + $0x10] sm:$0xff] (!%p184_p3)  ;;  %v609_v2 = vmov (!%p184_p3), 0   ;;  %v351_v3 = vld [vmem:[%s724_s2] sm:$0xff] (!%p184_p3)  ;;  %v354_v4 = vld [vmem:[%s724_s2 + $0x18] sm:$0xff] (!%p184_p3) }
   0x7   : > { %187 = sbr.rel (%p184_p3) target bundleno = 250 (0xfa), region = 36  ;;  %326 = vmatprep.mubr.f32.mxu0 (!%p184_p3), %v608_v0  ;;  %338 = vmatprep.mubr.f32.mxu1 (!%p184_p3), %v608_v0  ;;  %v352_v5 = vld [vmem:[%s724_s2 + $0x8] sm:$0xff] (!%p184_p3)  ;;  %vm257_vm0 = vcmask (!%p184_p3), 1043456   ;;  %v237_v8 = vld [vmem:[%s723_s1] sm:$0xff] (!%p184_p3)  ;;  %vm244_vm1 = vcmask (!%p184_p3), 31744   ;;  %v239_v9 = vld [vmem:[%s723_s1 + $0x10] sm:$0xff] (!%p184_p3) }
   0x8   : > { %582 = vset.pattern.permute.xlu1 (!%p184_p3), %v609_v2  ;;  %581 = vset.pattern.permute.xlu0 (!%p184_p3), %v609_v2  ;;  %v384_v10 = vld [vmem:[%s725_s3 + $0x8] sm:$0xff] (!%p184_p3)  ;;  %v383_v11 = vld [vmem:[%s725_s3] sm:$0xff] (!%p184_p3)  ;;  %v240_v13 = vld [vmem:[%s723_s1 + $0x18] sm:$0xff] (!%p184_p3) }
   0x9   : > { %367 = vperm.xlu1 (!%p184_p3), %582, %v353_v1   ;;  %357 = vperm.xlu0 (!%p184_p3), %581, %v351_v3   ;;  %v238_v12 = vld [vmem:[%s723_s1 + $0x8] sm:$0xff] (!%p184_p3)  ;;  %v386_v14 = vld [vmem:[%s725_s3 + $0x18] sm:$0xff] (!%p184_p3)  ;;  %v385_v15 = vld [vmem:[%s725_s3 + $0x10] sm:$0xff] (!%p184_p3) }
   0xd   : > { %372 = vperm.xlu1 (!%p184_p3), %582, %v354_v4   ;;  %362 = vperm.xlu0 (!%p184_p3), %581, %v352_v5  }
   0xe   : > { %s732_s15 = smov (!%p218_p4, %s598_s15), 1 }
   0xf   : > { %s551_s23 = sshll.u32 %s732_s15, 3  ;;  %s552_s25 = sshll.u32 %s732_s15, 6 }
  0x10   : > { %s225_s30 = scalar_lea.vmem %s722_s0, %s551_s23  ;;  %s703_s28 = scalar_lea.vmem %s726_s4, %s552_s25 }
  0x11   : > { %v241_v6 = vld [vmem:[%s225_s30] sm:$0xff]  ;;  %394 = vperm.xlu1 %582, %v384_v10   ;;  %389 = vperm.xlu0 %581, %v383_v11  }
  0x12   : > { %v243_v7 = vcombine.high %v241_v6, %v241_v6 }
  0x14   : > { %543 = vmatprep.subr.msk.mxu0 %vm257_vm0, %v243_v7  ;;  %553 = vmatprep.subr.msk.mxu1 %vm257_vm0, %v243_v7 }
  0x15   : > { %544 = vmatpush1.msk.msra.mxu0 %vm257_vm0, %v241_v6  ;;  %554 = vmatpush1.msk.msra.mxu1 %vm257_vm0, %v241_v6 }
  0x16   : > { %545 = vmatmul.mubr.msk.f32.vlgmr.msra.gmra.mrb[0].mxu0 %vm244_vm1, %v237_v8  ;;  %547 = vmatmul.mubr.msk.f32.vlgmr.msra.gmra.mrb[0].mxu1 %vm244_vm1, %v239_v9 }
  0x17   : > { %332 = vmatprep.mubr.f32.mxu0 %v608_v0  ;;  %344 = vmatprep.mubr.f32.mxu1 %v608_v0 }
  0x18   : > { %404 = vperm.xlu1 %582, %v386_v14   ;;  %399 = vperm.xlu0 %581, %v385_v15  }
  0x1a   : > { %546 = vmatmul.mubr.msk.f32.gmra.mrb[2].mxu0 %vm244_vm1, %v238_v12  ;;  %548 = vmatmul.mubr.msk.f32.gmra.mrb[2].mxu1 %vm244_vm1, %v240_v13 }
  0x88   : > { %v358_v16 = vpop.permute.xlu0 %357  ;;  %v368_v17 = vpop.permute.xlu1 %367 }
  0x8c   : > { %v363_v18 = vpop.permute.xlu0 %362  ;;  %v373_v19 = vpop.permute.xlu1 %372 }
  0x90   : > { %v390_v20 = vpop.permute.xlu0 %389  ;;  %v395_v27 = vpop.permute.xlu1 %394 }
  0x97   : > { %v400_v28 = vpop.permute.xlu0 %399  ;;  %v405_v47 = vpop.permute.xlu1 %404 }
  0xe9   : > { %v328_v21 = vpop.f32.mrb[0].mxu0  ;;  %v340_v22 = vpop.f32.mrb[0].mxu1 }
  0xea   : > { %v375_v23 = vmul.f32 %v358_v16, %v328_v21  ;;  %v379_v24 = vmul.f32 %v368_v17, %v340_v22  ;;  %v330_v25 = vpop.f32.mrb[1].mxu0  ;;  %v342_v26 = vpop.f32.mrb[1].mxu1 }
  0xeb   : > { %v376_v29 = vmul.f32 %v358_v16, %v330_v25  ;;  %v380_v30 = vmul.f32 %v368_v17, %v342_v26 }
  0xec   : > { %v407_v31 = vadd.f32 %v390_v20, %v375_v23  ;;  %v411_v32 = vadd.f32 %v400_v28, %v379_v24 }
  0xed   : > { %v408_v33 = vadd.f32 %v390_v20, %v376_v29  ;;  %v412_v34 = vadd.f32 %v400_v28, %v380_v30  ;;  %v334_v35 = vpop.f32.mrb[2].mxu0  ;;  %v346_v36 = vpop.f32.mrb[2].mxu1 }
  0xee   : > { %vm415_vm2 = vcmp.gt.f32.partialorder %v407_v31, 0.0  ;;  %v423_v37 = vmul.f32 0.2, %v407_v31  ;;  %vm419_vm3 = vcmp.gt.f32.partialorder %v411_v32, 0.0  ;;  %v427_v38 = vmul.f32 0.2, %v411_v32 }
  0xef   : > { %vm416_vm4 = vcmp.gt.f32.partialorder %v408_v33, 0.0  ;;  %v424_v39 = vmul.f32 0.2, %v408_v33  ;;  %vm420_vm5 = vcmp.gt.f32.partialorder %v412_v34, 0.0  ;;  %v428_v40 = vmul.f32 0.2, %v412_v34 }
  0xf0   : > { %v431_v41 = vsel %vm415_vm2, %v407_v31, %v423_v37  ;;  %v435_v42 = vsel %vm419_vm3, %v411_v32, %v427_v38  ;;  %v377_v43 = vmul.f32 %v363_v18, %v334_v35  ;;  %v381_v44 = vmul.f32 %v373_v19, %v346_v36  ;;  %v336_v45 = vpop.f32.mrb[3].mxu0  ;;  %v348_v46 = vpop.f32.mrb[3].mxu1 }
  0xf1   : > { %439 = vst [vmem:[%s703_s28] sm:$0xff] %v431_v41  ;;  %443 = vst [vmem:[%s703_s28 + $0x20] sm:$0xff] %v435_v42  ;;  %v432_v48 = vsel %vm416_vm4, %v408_v33, %v424_v39  ;;  %v436_v49 = vsel %vm420_vm5, %v412_v34, %v428_v40  ;;  %v378_v50 = vmul.f32 %v363_v18, %v336_v45 }
  0xf2   : > { %v382_v51 = vmul.f32 %v373_v19, %v348_v46  ;;  %440 = vst [vmem:[%s703_s28 + $0x8] sm:$0xff] %v432_v48  ;;  %444 = vst [vmem:[%s703_s28 + $0x28] sm:$0xff] %v436_v49  ;;  %v409_v52 = vadd.f32 %v395_v27, %v377_v43  ;;  %v413_v53 = vadd.f32 %v405_v47, %v381_v44 }
  0xf3   : > { %v410_v54 = vadd.f32 %v395_v27, %v378_v50 }
  0xf4   : > { %v414_v55 = vadd.f32 %v405_v47, %v382_v51  ;;  %vm417_vm6 = vcmp.gt.f32.partialorder %v409_v52, 0.0  ;;  %v425_v56 = vmul.f32 0.2, %v409_v52  ;;  %vm421_vm7 = vcmp.gt.f32.partialorder %v413_v53, 0.0 }
  0xf5   : > { %v429_v57 = vmul.f32 0.2, %v413_v53  ;;  %vm418_vm8 = vcmp.gt.f32.partialorder %v410_v54, 0.0  ;;  %v426_v58 = vmul.f32 0.2, %v410_v54 }
  0xf6   : > { %vm422_vm9 = vcmp.gt.f32.partialorder %v414_v55, 0.0  ;;  %v430_v59 = vmul.f32 0.2, %v414_v55  ;;  %v433_v60 = vsel %vm417_vm6, %v409_v52, %v425_v56 }
  0xf7   : > { %v437_v61 = vsel %vm421_vm7, %v413_v53, %v429_v57  ;;  %441 = vst [vmem:[%s703_s28 + $0x10] sm:$0xff] %v433_v60  ;;  %v434_v62 = vsel %vm418_vm8, %v410_v54, %v426_v58 }
  0xf8   : > { %445 = vst [vmem:[%s703_s28 + $0x30] sm:$0xff] %v437_v61  ;;  %v438_v63 = vsel %vm422_vm9, %v414_v55, %v430_v59  ;;  %442 = vst [vmem:[%s703_s28 + $0x18] sm:$0xff] %v434_v62 }
  0xf9   : > { %446 = vst [vmem:[%s703_s28 + $0x38] sm:$0xff] %v438_v63 }
  0xfa PF: > { %s14_s17 = sadd.s32 1, %s606_s17   ;;  %s727_s15 = smov %s602_s16 }
  0xfb   : > { %p11_p5 = scmp.ge.s32.totalorder %s14_s17, 4   ;;  %s728_s16 = smov %s730_s18 }
  0xfd   :  { %13 = sbr.rel (!%p11_p5) target bundleno = 2 (0x2), region = 66 }

</bundles_post_ra>
